<compile_context>
chip_gen: v5e
topology: v5e:2x2
jax: 0.10.0
libtpu: 0.0.40
codegen_flags: <defaults>
</compile_context>

<pallas_src>
import jax
import jax.numpy as jnp
from jax.experimental import pallas as pl
from jax.experimental.pallas import tpu as pltpu


def _round_up(x, m):
    return (x + m - 1) // m * m


def spanpair_kernel(idx_ref, enc_ref,
                    w1a_ref, w1b_ref, w1c_ref, w1d_ref, b1_ref,
                    w2_ref, b2_ref,
                    out_ref,
                    sum_h_ref, sum_t_ref):
    si = pl.program_id(1)                                   # seq-tile index (reduction axis)

    @pl.when(si == 0)
    def _():
        sum_h_ref[...] = jnp.zeros_like(sum_h_ref)
        sum_t_ref[...] = jnp.zeros_like(sum_t_ref)

    idx = idx_ref[...]                                      # [TB, 4] int32 (packed spans)
    hs, he = idx[:, 0:1], idx[:, 1:2]                       # head span, inclusive end
    ts, te = idx[:, 2:3], idx[:, 3:4]                       # tail span, inclusive end

    enc = enc_ref[...].astype(jnp.float32)                  # [TB, TS, H] bf16 stream -> f32
    tb, tseq, _ = enc.shape
    pos = si * tseq + jax.lax.broadcasted_iota(jnp.int32, (tb, tseq), 1)   # global positions

    mh = jnp.logical_and(pos >= hs, pos <= he).astype(jnp.float32)         # [TB, TS]
    mt = jnp.logical_and(pos >= ts, pos <= te).astype(jnp.float32)
    # Fused single pass: both masked sums consume the same loaded enc tile.
    sum_h_ref[...] += jnp.sum(enc * mh[:, :, None], axis=1)                # [TB, H]
    sum_t_ref[...] += jnp.sum(enc * mt[:, :, None], axis=1)

    @pl.when(si == pl.num_programs(1) - 1)
    def _():
        # Span token counts arithmetically (no mask reductions / XLU traffic).
        cnt_h = (he - hs + 1).astype(jnp.float32)           # [TB, 1]
        cnt_t = (te - ts + 1).astype(jnp.float32)
        m1 = sum_h_ref[...] * pl.reciprocal(cnt_h, approx=False)   # head span mean [TB, H]
        m2 = sum_t_ref[...] * pl.reciprocal(cnt_t, approx=False)   # tail span mean [TB, H]

        w1a, w1b, w1c, w1d = w1a_ref[...], w1b_ref[...], w1c_ref[...], w1d_ref[...]
        dt = w1a.dtype
        # feats = [m1, m2, m1*m2, |m1-m2|] @ w1 as four accumulating MXU pushes
        # (no lane-axis concat / relayout); bf16 operands, f32 accumulation.
        hid = jnp.dot(m1.astype(dt), w1a, preferred_element_type=jnp.float32)
        hid += jnp.dot(m2.astype(dt), w1b, preferred_element_type=jnp.float32)
        hid += jnp.dot((m1 * m2).astype(dt), w1c, preferred_element_type=jnp.float32)
        hid += jnp.dot(jnp.abs(m1 - m2).astype(dt), w1d, preferred_element_type=jnp.float32)
        hid = jnp.maximum(hid + b1_ref[...], 0.0)           # Linear -> ReLU (dropout = id)

        w2 = w2_ref[...]
        out_ref[...] = (jnp.dot(hid.astype(w2.dtype), w2,
                                preferred_element_type=jnp.float32) + b2_ref[...])


def _plan_tiles(B, S, H, F_pad, C_pad, enc_itemsize, w_itemsize, vmem_budget):
    """Pick (TB, TS) so the working set fits the VMEM budget."""
    B8 = _round_up(max(B, 1), 8)
    S8 = _round_up(S, 8)
    TB = min(B8, 256)
    if B8 >= 16:
        # Guarantee >= 2 batch grid steps so the "parallel" axis feeds both v7x TCs.
        TB = min(TB, _round_up((B8 + 1) // 2, 8))
    # Single-buffered (pl.Buffered(1)) weights + f32 biases, resident for the whole grid.
    w_bytes = (4 * H * F_pad + F_pad * C_pad) * w_itemsize + (F_pad + C_pad) * 4
    while True:
        fixed = (w_bytes
                 + 2 * TB * C_pad * 4          # double-buffered logits tile
                 + 2 * TB * 4 * 4              # double-buffered packed-index tile
                 + 2 * TB * H * 4)             # f32 span-sum scratch accumulators
        avail = vmem_budget - fixed
        ts_cap = avail // max(1, 2 * TB * H * enc_itemsize)   # double-buffered enc tile
        if ts_cap >= 8 or TB <= 8:
            break
        TB = max(8, (TB // 2) // 8 * 8)
    TS = int(min(S8, max(8, (ts_cap // 8) * 8)))
    return TB, TS


def spanpair_forward(enc_out, head_start, head_end, tail_start, tail_end,
                     w1, b1, w2, b2, *,
                     enc_dtype=jnp.bfloat16, weight_dtype=jnp.bfloat16,
                     vmem_budget_bytes=None):
    """Pallas forward: span mean-pool -> pair features -> 2-layer MLP logits [B, C]."""
    B, S, H = enc_out.shape
    assert w1.shape[0] == 4 * H
    FCL = w1.shape[1]
    C = w2.shape[1]

    # Per-chip VMEM budget (48/56 MiB on v7x's 64 MiB core, 96/112 MiB on v5e/v6e).
    phys = 64 << 20
    try:
        phys = int(pltpu.get_tpu_info().vmem_capacity_bytes)
    except Exception:
        pass
    if vmem_budget_bytes is None:
        vmem_budget_bytes = (phys * 3) // 4
    vmem_limit_bytes = max((phys * 7) // 8, vmem_budget_bytes + (4 << 20))

    # Lane-dense padding of the MLP dims (128-lane boundary).
    F_pad = _round_up(FCL, 128)
    C_pad = _round_up(C, 128)

    enc_itemsize = jax.dtypes.canonicalize_dtype(enc_dtype).itemsize
    w_itemsize = jax.dtypes.canonicalize_dtype(weight_dtype).itemsize
    TB, TS = _plan_tiles(B, S, H, F_pad, C_pad, enc_itemsize, w_itemsize, vmem_budget_bytes)

    B_pad = _round_up(B, TB)
    S_pad = _round_up(S, TS)

    enc = enc_out.astype(enc_dtype)
    if (B_pad - B) or (S_pad - S):
        enc = jnp.pad(enc, ((0, B_pad - B), (0, S_pad - S), (0, 0)))

    def _col(x):
        return jnp.asarray(x, dtype=jnp.int32).reshape(B, 1)

    # Pack the four index vectors into one [B, 4] input (one tiny DMA per step).
    idx = jnp.concatenate([_col(head_start), _col(head_end),
                           _col(tail_start), _col(tail_end)], axis=1)
    if B_pad - B:
        # Padded rows get start=end=0 -> span count 1 -> no divide-by-zero; sliced off below.
        idx = jnp.pad(idx, ((0, B_pad - B), (0, 0)))

    # Split w1 into its four H-row blocks; zero-pad FCL / num_classes columns; cast bf16.
    w1a, w1b, w1c, w1d = (w1[i * H:(i + 1) * H].astype(weight_dtype) for i in range(4))
    pad_cols = lambda a, n: jnp.pad(a, ((0, 0), (0, n - a.shape[1])))
    w1a, w1b, w1c, w1d = (pad_cols(w, F_pad) for w in (w1a, w1b, w1c, w1d))
    b1p = pad_cols(b1.reshape(1, FCL).astype(jnp.float32), F_pad)
    w2p = jnp.pad(w2.astype(weight_dtype), ((0, F_pad - FCL), (0, C_pad - C)))
    b2p = pad_cols(b2.reshape(1, C).astype(jnp.float32), C_pad)

    # Constant-index weights: single-buffered, stay VMEM-resident across the grid.
    resident = lambda shape: pl.BlockSpec(shape, lambda b, s: (0, 0),
                                          pipeline_mode=pl.Buffered(1))

    grid_spec = pltpu.PrefetchScalarGridSpec(
        num_scalar_prefetch=0,
        grid=(B_pad // TB, S_pad // TS),
        in_specs=[
            pl.BlockSpec((TB, 4), lambda b, s: (b, 0)),          # packed span indices
            pl.BlockSpec((TB, TS, H), lambda b, s: (b, s, 0)),   # encoder tile (bf16)
            resident((H, F_pad)),                                # w1 row-block: m1
            resident((H, F_pad)),                                # w1 row-block: m2
            resident((H, F_pad)),                                # w1 row-block: m1*m2
            resident((H, F_pad)),                                # w1 row-block: |m1-m2|
            resident((1, F_pad)),                                # b1
            resident((F_pad, C_pad)),                            # w2
            resident((1, C_pad)),                                # b2
        ],
        out_specs=pl.BlockSpec((TB, C_pad), lambda b, s: (b, 0)),
        scratch_shapes=[pltpu.VMEM((TB, H), jnp.float32),        # head span sum
                        pltpu.VMEM((TB, H), jnp.float32)],       # tail span sum
    )

    out = pl.pallas_call(
        spanpair_kernel,
        out_shape=jax.ShapeDtypeStruct((B_pad, C_pad), jnp.float32),
        grid_spec=grid_spec,
        compiler_params=pltpu.CompilerParams(
            dimension_semantics=("parallel", "arbitrary"),       # batch || , seq = reduction
            vmem_limit_bytes=int(vmem_limit_bytes),
        ),
    )(idx, enc, w1a, w1b, w1c, w1d, b1p, w2p, b2p)

    return out[:B, :C]


def spanpair_reference(enc_out, head_start, head_end, tail_start, tail_end,
                       w1, b1, w2, b2):
    B, S, H = enc_out.shape
    pos = jnp.arange(S, dtype=jnp.int32)[None, :]

    def span_mean(start, end):
        start = start.reshape(B, 1).astype(jnp.int32)
        end = end.reshape(B, 1).astype(jnp.int32)
        m = ((pos >= start) & (pos <= end)).astype(jnp.float32)
        return jnp.sum(enc_out * m[:, :, None], axis=1) / jnp.sum(m, axis=1, keepdims=True)

    m1 = span_mean(head_start, head_end)
    m2 = span_mean(tail_start, tail_end)
    feats = jnp.concatenate([m1, m2, m1 * m2, jnp.abs(m1 - m2)], axis=1)
    hid = jnp.maximum(feats @ w1 + b1, 0.0)
    return hid @ w2 + b2


if __name__ == "__main__":
    B, S, H = 2, 16, 32          # batch, seq, encoder hidden size
    FCL, C = 64, 8               # fcl_hidden_dim, num_classes

    key = jax.random.PRNGKey(0)
    k_enc, k_w1, k_b1, k_w2, k_b2 = jax.random.split(key, 5)

    # "encoder_outputs" stands in for AutoModel(...)[0] after dropout (eval mode).
    enc_out = jax.random.normal(k_enc, (B, S, H), dtype=jnp.float32)

    # Classification MLP params: Linears([4H, FCL, C]).
    w1 = jax.random.normal(k_w1, (4 * H, FCL), dtype=jnp.float32) * 0.05
    b1 = jax.random.normal(k_b1, (1, FCL), dtype=jnp.float32) * 0.01
    w2 = jax.random.normal(k_w2, (FCL, C), dtype=jnp.float32) * 0.05
    b2 = jax.random.normal(k_b2, (1, C), dtype=jnp.float32) * 0.01

    # Span boundaries (inclusive ends), per batch element.
    head_start = jnp.array([[1], [2]], dtype=jnp.int32)
    head_end   = jnp.array([[3], [5]], dtype=jnp.int32)
    tail_start = jnp.array([[6], [0]], dtype=jnp.int32)
    tail_end   = jnp.array([[9], [4]], dtype=jnp.int32)

    logits = spanpair_forward(enc_out, head_start, head_end, tail_start, tail_end,
                              w1, b1, w2, b2)
    logits = jax.block_until_ready(logits)

    # Reference evaluated on the same bf16-rounded encoder outputs / weights the
    # kernel streams (both accumulate in f32), so the comparison is apples-to-apples.
    enc_q = enc_out.astype(jnp.bfloat16).astype(jnp.float32)
    w1_q = w1.astype(jnp.bfloat16).astype(jnp.float32)
    w2_q = w2.astype(jnp.bfloat16).astype(jnp.float32)
    ref = spanpair_reference(enc_q, head_start, head_end, tail_start, tail_end,
                             w1_q, b1, w2_q, b2)

    assert logits.shape == (B, C)
    assert jnp.allclose(logits, ref, rtol=2e-2, atol=2e-2), \
        float(jnp.max(jnp.abs(logits - ref)))

    print("KERNEL_OK")
</pallas_src>

<mosaic_0001>
module attributes {stable_mosaic.version = 11 : i64} {
  func.func @spanpair_kernel(%arg0: i32, %arg1: i32, %arg2: memref<8x4xi32, #tpu.memory_space<vmem>>, %arg3: memref<8x16x32xbf16, #tpu.memory_space<vmem>>, %arg4: memref<32x128xbf16, #tpu.memory_space<vmem>>, %arg5: memref<32x128xbf16, #tpu.memory_space<vmem>>, %arg6: memref<32x128xbf16, #tpu.memory_space<vmem>>, %arg7: memref<32x128xbf16, #tpu.memory_space<vmem>>, %arg8: memref<1x128xf32, #tpu.memory_space<vmem>>, %arg9: memref<128x128xbf16, #tpu.memory_space<vmem>>, %arg10: memref<1x128xf32, #tpu.memory_space<vmem>>, %arg11: memref<8x128xf32, #tpu.memory_space<vmem>>, %arg12: memref<8x32xf32, #tpu.memory_space<vmem>>, %arg13: memref<8x32xf32, #tpu.memory_space<vmem>>) attributes {dimension_semantics = [#tpu.dimension_semantics<parallel>, #tpu.dimension_semantics<arbitrary>], iteration_bounds = array<i64: 1, 1>, scalar_prefetch = 0 : i64, scratch_operands = 2 : i64, tpu.core_type = #tpu.core_type<tc>, window_params = [{transform_indices = @transform_0, window_bounds = array<i64: 8, 4>}, {transform_indices = @transform_1, window_bounds = array<i64: 8, 16, 32>}, {pipeline_mode = #tpu.pipeline_mode<synchronous>, transform_indices = @transform_2, window_bounds = array<i64: 32, 128>}, {pipeline_mode = #tpu.pipeline_mode<synchronous>, transform_indices = @transform_3, window_bounds = array<i64: 32, 128>}, {pipeline_mode = #tpu.pipeline_mode<synchronous>, transform_indices = @transform_4, window_bounds = array<i64: 32, 128>}, {pipeline_mode = #tpu.pipeline_mode<synchronous>, transform_indices = @transform_5, window_bounds = array<i64: 32, 128>}, {pipeline_mode = #tpu.pipeline_mode<synchronous>, transform_indices = @transform_6, window_bounds = array<i64: 1, 128>}, {pipeline_mode = #tpu.pipeline_mode<synchronous>, transform_indices = @transform_7, window_bounds = array<i64: 128, 128>}, {pipeline_mode = #tpu.pipeline_mode<synchronous>, transform_indices = @transform_8, window_bounds = array<i64: 1, 128>}, {transform_indices = @transform_9, window_bounds = array<i64: 8, 128>}]} {
    %c0_i32 = arith.constant 0 : i32
    %0 = arith.cmpi eq, %arg1, %c0_i32 : i32
    %1 = arith.extui %0 : i1 to i32
    %c0_i32_0 = arith.constant 0 : i32
    %2 = arith.cmpi ne, %1, %c0_i32_0 : i32
    scf.if %2 {
      %cst_16 = arith.constant 0.000000e+00 : f32
      %45 = vector.broadcast %cst_16 : f32 to vector<8x32xf32>
      %c0_17 = arith.constant 0 : index
      %c0_18 = arith.constant 0 : index
      %46 = vector.load %arg12[%c0_17, %c0_18] : memref<8x32xf32, #tpu.memory_space<vmem>>, vector<8x32xf32>
      tpu.vector_store %arg12[%c0_17, %c0_18], %45 {strides = array<i32>} : memref<8x32xf32, #tpu.memory_space<vmem>>, vector<8x32xf32>,
      %cst_19 = arith.constant 0.000000e+00 : f32
      %47 = vector.broadcast %cst_19 : f32 to vector<8x32xf32>
      %c0_20 = arith.constant 0 : index
      %c0_21 = arith.constant 0 : index
      %48 = vector.load %arg13[%c0_20, %c0_21] : memref<8x32xf32, #tpu.memory_space<vmem>>, vector<8x32xf32>
      tpu.vector_store %arg13[%c0_20, %c0_21], %47 {strides = array<i32>} : memref<8x32xf32, #tpu.memory_space<vmem>>, vector<8x32xf32>,
    } else {
    }
    %c0 = arith.constant 0 : index
    %c0_1 = arith.constant 0 : index
    %3 = vector.load %arg2[%c0, %c0_1] : memref<8x4xi32, #tpu.memory_space<vmem>>, vector<8x4xi32>
    %4 = vector.extract_strided_slice %3 {offsets = [0, 0], sizes = [8, 1], strides = [1, 1]} : vector<8x4xi32> to vector<8x1xi32>
    %5 = vector.extract_strided_slice %3 {offsets = [0, 1], sizes = [8, 1], strides = [1, 1]} : vector<8x4xi32> to vector<8x1xi32>
    %6 = vector.extract_strided_slice %3 {offsets = [0, 2], sizes = [8, 1], strides = [1, 1]} : vector<8x4xi32> to vector<8x1xi32>
    %7 = vector.extract_strided_slice %3 {offsets = [0, 3], sizes = [8, 1], strides = [1, 1]} : vector<8x4xi32> to vector<8x1xi32>
    %c0_2 = arith.constant 0 : index
    %c0_3 = arith.constant 0 : index
    %c0_4 = arith.constant 0 : index
    %8 = vector.load %arg3[%c0_2, %c0_3, %c0_4] : memref<8x16x32xbf16, #tpu.memory_space<vmem>>, vector<8x16x32xbf16>
    %9 = arith.extf %8 : vector<8x16x32xbf16> to vector<8x16x32xf32>
    %c16_i32 = arith.constant 16 : i32
    %10 = arith.muli %arg1, %c16_i32 : i32
    %11 = tpu.iota {dimensions = array<i32: 1>} : vector<8x16xi32>
    %12 = vector.broadcast %10 : i32 to vector<8x16xi32>
    %13 = arith.addi %12, %11 : vector<8x16xi32>
    %14 = vector.broadcast %4 : vector<8x1xi32> to vector<8x16xi32>
    %15 = arith.cmpi sge, %13, %14 : vector<8x16xi32>
    %16 = vector.broadcast %5 : vector<8x1xi32> to vector<8x16xi32>
    %17 = arith.cmpi sle, %13, %16 : vector<8x16xi32>
    %18 = arith.andi %15, %17 : vector<8x16xi1>
    %19 = arith.extui %18 : vector<8x16xi1> to vector<8x16xi32>
    %20 = arith.sitofp %19 : vector<8x16xi32> to vector<8x16xf32>
    %21 = vector.broadcast %6 : vector<8x1xi32> to vector<8x16xi32>
    %22 = arith.cmpi sge, %13, %21 : vector<8x16xi32>
    %23 = vector.broadcast %7 : vector<8x1xi32> to vector<8x16xi32>
    %24 = arith.cmpi sle, %13, %23 : vector<8x16xi32>
    %25 = arith.andi %22, %24 : vector<8x16xi1>
    %26 = arith.extui %25 : vector<8x16xi1> to vector<8x16xi32>
    %27 = arith.sitofp %26 : vector<8x16xi32> to vector<8x16xf32>
    %c0_5 = arith.constant 0 : index
    %c0_6 = arith.constant 0 : index
    %28 = vector.load %arg12[%c0_5, %c0_6] : memref<8x32xf32, #tpu.memory_space<vmem>>, vector<8x32xf32>
    %29 = vector.shape_cast %20 : vector<8x16xf32> to vector<8x16x1xf32>
    %30 = vector.broadcast %29 : vector<8x16x1xf32> to vector<8x16x32xf32>
    %31 = arith.mulf %9, %30 : vector<8x16x32xf32>
    %cst = arith.constant dense<0.000000e+00> : vector<8x32xf32>
    %32 = vector.multi_reduction <add>, %31, %cst [1] : vector<8x16x32xf32> to vector<8x32xf32>
    %33 = arith.addf %28, %32 : vector<8x32xf32>
    %c0_7 = arith.constant 0 : index
    %c0_8 = arith.constant 0 : index
    %34 = vector.load %arg12[%c0_7, %c0_8] : memref<8x32xf32, #tpu.memory_space<vmem>>, vector<8x32xf32>
    tpu.vector_store %arg12[%c0_7, %c0_8], %33 {strides = array<i32>} : memref<8x32xf32, #tpu.memory_space<vmem>>, vector<8x32xf32>,
    %c0_9 = arith.constant 0 : index
    %c0_10 = arith.constant 0 : index
    %35 = vector.load %arg13[%c0_9, %c0_10] : memref<8x32xf32, #tpu.memory_space<vmem>>, vector<8x32xf32>
    %36 = vector.shape_cast %27 : vector<8x16xf32> to vector<8x16x1xf32>
    %37 = vector.broadcast %36 : vector<8x16x1xf32> to vector<8x16x32xf32>
    %38 = arith.mulf %9, %37 : vector<8x16x32xf32>
    %cst_11 = arith.constant dense<0.000000e+00> : vector<8x32xf32>
    %39 = vector.multi_reduction <add>, %38, %cst_11 [1] : vector<8x16x32xf32> to vector<8x32xf32>
    %40 = arith.addf %35, %39 : vector<8x32xf32>
    %c0_12 = arith.constant 0 : index
    %c0_13 = arith.constant 0 : index
    %41 = vector.load %arg13[%c0_12, %c0_13] : memref<8x32xf32, #tpu.memory_space<vmem>>, vector<8x32xf32>
    tpu.vector_store %arg13[%c0_12, %c0_13], %40 {strides = array<i32>} : memref<8x32xf32, #tpu.memory_space<vmem>>, vector<8x32xf32>,
    %c0_i32_14 = arith.constant 0 : i32
    %42 = arith.cmpi eq, %arg1, %c0_i32_14 : i32
    %43 = arith.extui %42 : i1 to i32
    %c0_i32_15 = arith.constant 0 : i32
    %44 = arith.cmpi ne, %43, %c0_i32_15 : i32
    scf.if %44 {
      %45 = arith.subi %5, %4 : vector<8x1xi32>
      %c1_i32 = arith.constant 1 : i32
      %46 = vector.broadcast %c1_i32 : i32 to vector<8x1xi32>
      %47 = arith.addi %45, %46 : vector<8x1xi32>
      %48 = arith.sitofp %47 : vector<8x1xi32> to vector<8x1xf32>
      %49 = arith.subi %7, %6 : vector<8x1xi32>
      %c1_i32_16 = arith.constant 1 : i32
      %50 = vector.broadcast %c1_i32_16 : i32 to vector<8x1xi32>
      %51 = arith.addi %49, %50 : vector<8x1xi32>
      %52 = arith.sitofp %51 : vector<8x1xi32> to vector<8x1xf32>
      %c0_17 = arith.constant 0 : index
      %c0_18 = arith.constant 0 : index
      %53 = vector.load %arg12[%c0_17, %c0_18] : memref<8x32xf32, #tpu.memory_space<vmem>>, vector<8x32xf32>
      %54 = tpu.reciprocal %48 : vector<8x1xf32> -> vector<8x1xf32>
      %55 = vector.broadcast %54 : vector<8x1xf32> to vector<8x32xf32>
      %56 = arith.mulf %53, %55 : vector<8x32xf32>
      %c0_19 = arith.constant 0 : index
      %c0_20 = arith.constant 0 : index
      %57 = vector.load %arg13[%c0_19, %c0_20] : memref<8x32xf32, #tpu.memory_space<vmem>>, vector<8x32xf32>
      %58 = tpu.reciprocal %52 : vector<8x1xf32> -> vector<8x1xf32>
      %59 = vector.broadcast %58 : vector<8x1xf32> to vector<8x32xf32>
      %60 = arith.mulf %57, %59 : vector<8x32xf32>
      %c0_21 = arith.constant 0 : index
      %c0_22 = arith.constant 0 : index
      %61 = vector.load %arg4[%c0_21, %c0_22] : memref<32x128xbf16, #tpu.memory_space<vmem>>, vector<32x128xbf16>
      %c0_23 = arith.constant 0 : index
      %c0_24 = arith.constant 0 : index
      %62 = vector.load %arg5[%c0_23, %c0_24] : memref<32x128xbf16, #tpu.memory_space<vmem>>, vector<32x128xbf16>
      %c0_25 = arith.constant 0 : index
      %c0_26 = arith.constant 0 : index
      %63 = vector.load %arg6[%c0_25, %c0_26] : memref<32x128xbf16, #tpu.memory_space<vmem>>, vector<32x128xbf16>
      %c0_27 = arith.constant 0 : index
      %c0_28 = arith.constant 0 : index
      %64 = vector.load %arg7[%c0_27, %c0_28] : memref<32x128xbf16, #tpu.memory_space<vmem>>, vector<32x128xbf16>
      %65 = arith.truncf %56 : vector<8x32xf32> to vector<8x32xbf16>
      %cst_29 = arith.constant dense<0.000000e+00> : vector<8x128xf32>
      %66 = tpu.matmul %65, %61, %cst_29 {dimension_numbers = #tpu.dot_dimension_numbers<[1], [0], [0], [1], [0, 0, 1, 1], [], []>} : vector<8x32xbf16>, vector<32x128xbf16>, vector<8x128xf32> -> vector<8x128xf32>
      %67 = arith.truncf %60 : vector<8x32xf32> to vector<8x32xbf16>
      %cst_30 = arith.constant dense<0.000000e+00> : vector<8x128xf32>
      %68 = tpu.matmul %67, %62, %cst_30 {dimension_numbers = #tpu.dot_dimension_numbers<[1], [0], [0], [1], [0, 0, 1, 1], [], []>} : vector<8x32xbf16>, vector<32x128xbf16>, vector<8x128xf32> -> vector<8x128xf32>
      %69 = arith.addf %66, %68 : vector<8x128xf32>
      %70 = arith.mulf %56, %60 : vector<8x32xf32>
      %71 = arith.truncf %70 : vector<8x32xf32> to vector<8x32xbf16>
      %cst_31 = arith.constant dense<0.000000e+00> : vector<8x128xf32>
      %72 = tpu.matmul %71, %63, %cst_31 {dimension_numbers = #tpu.dot_dimension_numbers<[1], [0], [0], [1], [0, 0, 1, 1], [], []>} : vector<8x32xbf16>, vector<32x128xbf16>, vector<8x128xf32> -> vector<8x128xf32>
      %73 = arith.addf %69, %72 : vector<8x128xf32>
      %74 = arith.subf %56, %60 : vector<8x32xf32>
      %75 = math.absf %74 : vector<8x32xf32>
      %76 = arith.truncf %75 : vector<8x32xf32> to vector<8x32xbf16>
      %cst_32 = arith.constant dense<0.000000e+00> : vector<8x128xf32>
      %77 = tpu.matmul %76, %64, %cst_32 {dimension_numbers = #tpu.dot_dimension_numbers<[1], [0], [0], [1], [0, 0, 1, 1], [], []>} : vector<8x32xbf16>, vector<32x128xbf16>, vector<8x128xf32> -> vector<8x128xf32>
      %78 = arith.addf %73, %77 : vector<8x128xf32>
      %c0_33 = arith.constant 0 : index
      %c0_34 = arith.constant 0 : index
      %79 = vector.load %arg8[%c0_33, %c0_34] : memref<1x128xf32, #tpu.memory_space<vmem>>, vector<1x128xf32>
      %80 = vector.broadcast %79 : vector<1x128xf32> to vector<8x128xf32>
      %81 = arith.addf %78, %80 : vector<8x128xf32>
      %cst_35 = arith.constant 0.000000e+00 : f32
      %82 = vector.broadcast %cst_35 : f32 to vector<8x128xf32>
      %83 = arith.maximumf %81, %82 : vector<8x128xf32>
      %c0_36 = arith.constant 0 : index
      %c0_37 = arith.constant 0 : index
      %84 = vector.load %arg9[%c0_36, %c0_37] : memref<128x128xbf16, #tpu.memory_space<vmem>>, vector<128x128xbf16>
      %85 = arith.truncf %83 : vector<8x128xf32> to vector<8x128xbf16>
      %cst_38 = arith.constant dense<0.000000e+00> : vector<8x128xf32>
      %86 = tpu.matmul %85, %84, %cst_38 {dimension_numbers = #tpu.dot_dimension_numbers<[1], [0], [0], [1], [0, 0, 1, 1], [], []>} : vector<8x128xbf16>, vector<128x128xbf16>, vector<8x128xf32> -> vector<8x128xf32>
      %c0_39 = arith.constant 0 : index
      %c0_40 = arith.constant 0 : index
      %87 = vector.load %arg10[%c0_39, %c0_40] : memref<1x128xf32, #tpu.memory_space<vmem>>, vector<1x128xf32>
      %88 = vector.broadcast %87 : vector<1x128xf32> to vector<8x128xf32>
      %89 = arith.addf %86, %88 : vector<8x128xf32>
      %c0_41 = arith.constant 0 : index
      %c0_42 = arith.constant 0 : index
      %90 = vector.load %arg11[%c0_41, %c0_42] : memref<8x128xf32, #tpu.memory_space<vmem>>, vector<8x128xf32>
      tpu.vector_store %arg11[%c0_41, %c0_42], %89 {strides = array<i32>} : memref<8x128xf32, #tpu.memory_space<vmem>>, vector<8x128xf32>,
    } else {
    }
    return
  }
  func.func @transform_0(%arg0: i32, %arg1: i32) -> (i32, i32) {
    %c0_i32 = arith.constant 0 : i32
    %c0_i32_0 = arith.constant 0 : i32
    return %arg0, %c0_i32 : i32, i32
  }
  func.func @transform_1(%arg0: i32, %arg1: i32) -> (i32, i32, i32) {
    %c0_i32 = arith.constant 0 : i32
    %c0_i32_0 = arith.constant 0 : i32
    return %arg0, %arg1, %c0_i32 : i32, i32, i32
  }
  func.func @transform_2(%arg0: i32, %arg1: i32) -> (i32, i32) {
    %c0_i32 = arith.constant 0 : i32
    %c0_i32_0 = arith.constant 0 : i32
    %c0_i32_1 = arith.constant 0 : i32
    return %c0_i32, %c0_i32_0 : i32, i32
  }
  func.func @transform_3(%arg0: i32, %arg1: i32) -> (i32, i32) {
    %c0_i32 = arith.constant 0 : i32
    %c0_i32_0 = arith.constant 0 : i32
    %c0_i32_1 = arith.constant 0 : i32
    return %c0_i32, %c0_i32_0 : i32, i32
  }
  func.func @transform_4(%arg0: i32, %arg1: i32) -> (i32, i32) {
    %c0_i32 = arith.constant 0 : i32
    %c0_i32_0 = arith.constant 0 : i32
    %c0_i32_1 = arith.constant 0 : i32
    return %c0_i32, %c0_i32_0 : i32, i32
  }
  func.func @transform_5(%arg0: i32, %arg1: i32) -> (i32, i32) {
    %c0_i32 = arith.constant 0 : i32
    %c0_i32_0 = arith.constant 0 : i32
    %c0_i32_1 = arith.constant 0 : i32
    return %c0_i32, %c0_i32_0 : i32, i32
  }
  func.func @transform_6(%arg0: i32, %arg1: i32) -> (i32, i32) {
    %c0_i32 = arith.constant 0 : i32
    %c0_i32_0 = arith.constant 0 : i32
    %c0_i32_1 = arith.constant 0 : i32
    return %c0_i32, %c0_i32_0 : i32, i32
  }
  func.func @transform_7(%arg0: i32, %arg1: i32) -> (i32, i32) {
    %c0_i32 = arith.constant 0 : i32
    %c0_i32_0 = arith.constant 0 : i32
    %c0_i32_1 = arith.constant 0 : i32
    return %c0_i32, %c0_i32_0 : i32, i32
  }
  func.func @transform_8(%arg0: i32, %arg1: i32) -> (i32, i32) {
    %c0_i32 = arith.constant 0 : i32
    %c0_i32_0 = arith.constant 0 : i32
    %c0_i32_1 = arith.constant 0 : i32
    return %c0_i32, %c0_i32_0 : i32, i32
  }
  func.func @transform_9(%arg0: i32, %arg1: i32) -> (i32, i32) {
    %c0_i32 = arith.constant 0 : i32
    %c0_i32_0 = arith.constant 0 : i32
    return %arg0, %c0_i32 : i32, i32
  }
}

</mosaic_0001>

<bundles_post_ra>
// kernel: tpu_custom_call.1
= control target key start
LH: loop header
LB: loop body
LE: loop exit
PB: predicated region body
PF: predicated region fallthrough
CT: control target
= control target key end

     0   :  { %14 = vsyncpa [#allocation5], 0  ;;  %s1562_s0 = inlined_call_operand.vmem [shape: s32[8,4], index: 0, kind: input, shape index: {}]   ;;  %s1563_s1 = inlined_call_operand.hbm [shape: bf16[8,16,32], index: 1, kind: input, shape index: {}]   ;;  %s1564_s2 = inlined_call_operand.hbm [shape: bf16[32,128], index: 2, kind: input, shape index: {}]   ;;  %s1565_s3 = inlined_call_operand.hbm [shape: bf16[32,128], index: 3, kind: input, shape index: {}]   ;;  %s1566_s4 = inlined_call_operand.hbm [shape: bf16[32,128], index: 4, kind: input, shape index: {}]   ;;  %s1567_s5 = inlined_call_operand.vmem [shape: bf16[32,128], index: 5, kind: input, shape index: {}]   ;;  %s1568_s6 = inlined_call_operand.vmem [shape: f32[1,128], index: 6, kind: input, shape index: {}]   ;;  %s1569_s7 = inlined_call_operand.hbm [shape: bf16[128,128], index: 7, kind: input, shape index: {}]   ;;  %s1570_s8 = inlined_call_operand.vmem [shape: f32[1,128], index: 8, kind: input, shape index: {}]   ;;  %s1571_s9 = inlined_call_operand.hbm [shape: f32[8,128], index: 9, kind: output, shape index: {}]  }
   0x1   :  { %15 = vsyncpa [#allocation8], 0 }
   0x2   :  { %16 = vsyncpa [#allocation11], 0 }
   0x3   :  { %17 = vsyncpa [#allocation6], 0  ;;  %s37_s11 = sshll.u32 %s1564_s2, 4  ;;  %s1282_s12 = smov [#allocation7]   ;;  %s38_s11 = int_to_ptr.hbm [resolvable:$true] %s37_s11 }
   0x4   :  { %s39_s13 = sshll.u32 %s1282_s12, 4  ;;  %s63_s16 = sshll.u32 %s1566_s4, 4  ;;  %s40_s13 = int_to_ptr.vmem [resolvable:$true] %s39_s13  ;;  %s64_s16 = int_to_ptr.hbm [resolvable:$true] %s63_s16 }
   0x5   :  { %s1283_s17 = smov 64   ;;  %s1284_s18 = smov 4  }
   0x6   :  { %45 = dma.hbm_to_vmem [thread:$0]  %s38_s11, 256, %s40_s13, [#allocation8], %s1283_s17, %s1283_s17, %s1284_s18  }
   0x7   :  { %s1285_s19 = smov [#allocation10]   ;;  %s24_s23 = sshll.u32 %s1563_s1, 4  ;;  %s25_s23 = int_to_ptr.hbm [resolvable:$true] %s24_s23 }
   0x8   :  { %s65_s20 = sshll.u32 %s1285_s19, 4  ;;  %s50_s25 = sshll.u32 %s1565_s3, 4  ;;  %s66_s20 = int_to_ptr.vmem [resolvable:$true] %s65_s20  ;;  %s51_s25 = int_to_ptr.hbm [resolvable:$true] %s50_s25 }
   0x9   :  { %71 = dma.hbm_to_vmem [thread:$0]  %s64_s16, 256, %s66_s20, [#allocation11], %s1283_s17, %s1283_s17, %s1284_s18  }
   0xa   :  { %s1286_s26 = smov [#allocation4]   ;;  %s1287_s4 = smov [#allocation9]  }
   0xb   :  { %s26_s27 = sshll.u32 %s1286_s26, 4  ;;  %s52_s28 = sshll.u32 %s1287_s4, 4  ;;  %s27_s27 = int_to_ptr.vmem [resolvable:$true] %s26_s27  ;;  %s53_s28 = int_to_ptr.vmem [resolvable:$true] %s52_s28 }
   0xc   :  { %32 = dma.hbm_to_vmem [thread:$0]  %s25_s23, 1024, %s27_s27, [#allocation5], %s1283_s17, %s1283_s17, %s1284_s18  }
   0xd   :  { %s80_s10 = sshll.u32 %s1569_s7, 4  ;;  %s1288_s1 = smov [#allocation12]   ;;  %s81_s10 = int_to_ptr.hbm [resolvable:$true] %s80_s10 }
   0xe   :  { %58 = dma.hbm_to_vmem [thread:$0]  %s51_s25, 256, %s53_s28, [#allocation8], %s1283_s17, %s1283_s17, %s1284_s18  }
   0xf   :  { %s82_s11 = sshll.u32 %s1288_s1, 4  ;;  %s83_s11 = int_to_ptr.vmem [resolvable:$true] %s82_s11 }
  0x10   :  { %88 = dma.hbm_to_vmem [thread:$0]  %s81_s10, 1024, %s83_s11, [#allocation11], %s1283_s17, %s1283_s17, %s1284_s18  }
  0x11   :  { %1274 = dma.done.wait [#allocation5], 1024  }
  0x12   :  { %1275 = vsyncadd [#allocation5], 4294966272 }
  0x13   :  { %1276 = dma.done.wait [#allocation8], 512  }
  0x14   :  { %1277 = vsyncadd [#allocation8], 4294966784 }
  0x15   :  { %1278 = dma.done.wait [#allocation11], 1280  }
  0x16   :  { %1279 = vsyncadd [#allocation11], 4294966016  ;;  %v1289_v0 = vmov 2   ;;  %v1290_v1 = vmov 0   ;;  %v153_v2 = vlaneseq  ;;  %v1367_v4 = vld [vmem:[%s1562_s0] sm:$0xff]  ;;  %s1291_s12 = smov 1  }
  0x17   :  { %1028 = vset.pattern.permute.xlu0 %v1289_v0  ;;  %1030 = vset.pattern.permute.xlu1 %v1290_v1  ;;  %v1292_v5 = vmov 3   ;;  %v1293_v6 = vmov 1   ;;  %vm116_vm0 = vcmask 261120   ;;  %v1294_v8 = vmov 0.0   ;;  %v1395_v55 = vld [vmem:[#allocation4] sm:$0xff]   ;;  %v1397_v56 = vld [vmem:[#allocation4 + $0x8] sm:$0xff]  }
  0x18   :  { %v1361_v3 = vshrl.u32 %v153_v2, 7  ;;  %169 = vperm.xlu0 %1028, %v1367_v4   ;;  %158 = vperm.xlu1 %1030, %v1367_v4   ;;  %117 = vst.msk [vmem:[#allocation2] sm:$0xff] %vm116_vm0, %v1294_v8  ;;  %v154_v11 = vand.u32 127, %v153_v2  ;;  %v1399_v57 = vld [vmem:[#allocation4 + $0x10] sm:$0xff]   ;;  %v977_v58 = vunpack.c.l.bf16 %v1395_v55  ;;  %v981_v59 = vunpack.c.l.bf16 %v1397_v56  ;;  %v1404_v0 = vld [vmem:[#allocation4 + $0x18] sm:$0xff]   ;;  %s1295_s19 = smov [#allocation13]  }
  0x19   :  { %612 = vrot.lane.b32.xlu2 %v1367_v4, %s1291_s12  ;;  %118 = vst.msk [vmem:[#allocation3] sm:$0xff] %vm116_vm0, %v1294_v8  ;;  %v985_v63 = vunpack.c.l.bf16 %v1399_v57  ;;  %v986_v2 = vunpack.c.h.bf16 %v1399_v57  ;;  %vm381_vm11 = vcmask 1041409   ;;  %vm383_vm12 = vcmask 1042434   ;;  %s875_s20 = sshll.u32 %s1295_s19, 4  ;;  %s877_s23 = sshll.u32 %s1571_s9, 4  ;;  %s876_s20 = int_to_ptr.vmem [resolvable:$true] %s875_s20  ;;  %s878_s23 = int_to_ptr.hbm [resolvable:$true] %s877_s23 }
  0x1a   :  { %1032 = vset.pattern.permute.xlu2 %v1361_v3  ;;  %v1377_v7 = vadd.s32 8, %v1361_v3  ;;  %vm385_vm13 = vcmask 1043459   ;;  %vm387_vm14 = vcmask 1044484   ;;  %vm389_vm15 = vcmask 1045509  }
  0x20   :  { %1029 = vset.pattern.permute.xlu0 %v1292_v5  ;;  %1031 = vset.pattern.permute.xlu1 %v1293_v6 }
  0x21   :  { %173 = vperm.xlu0 %1029, %v1367_v4   ;;  %162 = vperm.xlu1 %1031, %v1367_v4  }
  0x29   :  { %1038 = vset.pattern.permute.xlu1 %v1377_v7  ;;  %1049 = vset.pattern.permute.xlu0 %v1377_v7 }
  0x73   :  { %v613_v33 = vpop.permute.xlu2 %612 }
  0x74   :  { %v614_v35 = vsub.s32 %v1367_v4, %v613_v33  ;;  %v982_v4 = vunpack.c.h.bf16 %v1397_v56  ;;  %v1434_v33 = vld [vmem:[#allocation4 + $0x20] sm:$0xff]  }
  0x76   :  { %v615_v36 = vadd.s32 1, %v614_v35 }
  0x78   :  { %v616_v37 = vcvt.s32.f32 %v615_v36  ;;  %v1436_v36 = vld [vmem:[#allocation4 + $0x28] sm:$0xff]  }
  0x7a   :  { %1128 = vrcp.f32 %v616_v37  ;;  %vm623_vm7 = vweird.f32 %v616_v37  ;;  %v629_v48 = vand.u32 2147483648, %v616_v37  ;;  %v627_v50 = vand.u32 2147483647, %v616_v37 }
  0x7c   :  { %v630_v51 = vor.u32 1.1754944e-38, %v629_v48  ;;  %vm628_vm10 = vcmp.eq.f32.partialorder %v627_v50, 8.507059e+37  ;;  %v1443_v48 = vld [vmem:[#allocation4 + $0x38] sm:$0xff]   ;;  %v997_v50 = vunpack.c.l.bf16 %v1436_v36 }
  0x80   :  { %v1129_v41 = vpop.eup %1128 }
  0x81   :  { %v619_v42 = vmul.f32 %v1129_v41, %v616_v37  ;;  %vm624_vm8 = vweird.f32 %v1129_v41 }
  0x82   :  { %vm625_vm9 = vmor %vm623_vm7, %vm624_vm8 }
  0x83   :  { %v620_v43 = vsub.f32 1.0, %v619_v42 }
  0x85   :  { %v621_v46 = vmul.f32 %v1129_v41, %v620_v43 }
  0x87   :  { %v622_v49 = vadd.f32 %v1129_v41, %v621_v46 }
  0x89   :  { %v626_v52 = vsel %vm625_vm9, %v1129_v41, %v622_v49  ;;  %v998_v41 = vunpack.c.h.bf16 %v1436_v36  ;;  %v993_v49 = vunpack.c.l.bf16 %v1434_v33 }
  0x8a   :  { %v170_v9 = vpop.permute.xlu0 %169  ;;  %v159_v10 = vpop.permute.xlu1 %158  ;;  %v631_v53 = vsel %vm628_vm10, %v630_v51, %v626_v52 }
  0x8b   :  { %vm171_vm1 = vcmp.ge.s32.totalorder %v154_v11, %v170_v9  ;;  %vm160_vm4 = vcmp.ge.s32.totalorder %v154_v11, %v159_v10 }
  0x93   :  { %v174_v12 = vpop.permute.xlu0 %173  ;;  %v163_v18 = vpop.permute.xlu1 %162 }
  0x94   :  { %vm175_vm2 = vcmp.le.s32.totalorder %v154_v11, %v174_v12  ;;  %vm164_vm5 = vcmp.le.s32.totalorder %v154_v11, %v163_v18 }
  0x95   :  { %vm176_vm3 = vmand %vm171_vm1, %vm175_vm2  ;;  %vm391_vm1 = vcmask 1046534   ;;  %vm393_vm2 = vcmask 1047559  }
  0x96   :  { %v890_v13 = vsel %vm176_vm3, 1.0, %v1294_v8  ;;  %vm165_vm6 = vmand %vm160_vm4, %vm164_vm5 }
  0x97   :  { %v425_v14 = vperm.slane %v890_v13, 2  ;;  %v438_v15 = vperm.slane %v890_v13, 3  ;;  %v399_v16 = vperm.slane %v890_v13, 0  ;;  %v412_v17 = vperm.slane %v890_v13, 1 }
  0x98   :  { %v889_v21 = vsel %vm165_vm6, 1.0, %v1294_v8  ;;  %v451_v24 = vperm.slane %v890_v13, 4  ;;  %v464_v25 = vperm.slane %v890_v13, 5  ;;  %v477_v28 = vperm.slane %v890_v13, 6 }
  0x99   :  { %v1050_v19 = vpack.i.bf16 %v438_v15, %v425_v14  ;;  %v1039_v20 = vpack.i.bf16 %v412_v17, %v399_v16  ;;  %v180_v22 = vperm.slane %v889_v21, 0  ;;  %v193_v23 = vperm.slane %v889_v21, 1 }
  0x9a   :  { %v1056_v27 = vpack.i.bf16 %v464_v25, %v451_v24  ;;  %v490_v29 = vperm.slane %v890_v13, 7  ;;  %v232_v31 = vperm.slane %v889_v21, 4  ;;  %v245_v32 = vperm.slane %v889_v21, 5 }
  0x9b   :  { %1051 = vperm.xlu0 %1049, %v1050_v19   ;;  %1040 = vperm.xlu1 %1038, %v1039_v20   ;;  %v1078_v26 = vpack.i.bf16 %v193_v23, %v180_v22  ;;  %v206_v38 = vperm.slane %v889_v21, 2  ;;  %v219_v39 = vperm.slane %v889_v21, 3  ;;  %v258_v44 = vperm.slane %v889_v21, 6 }
  0x9c   :  { %1034 = vperm.xlu2 %1032, %v1039_v20   ;;  %v1067_v30 = vpack.i.bf16 %v490_v29, %v477_v28  ;;  %v1106_v34 = vpack.i.bf16 %v245_v32, %v232_v31  ;;  %v271_v45 = vperm.slane %v889_v21, 7  ;;  %v989_v14 = vunpack.c.l.bf16 %v1404_v0 }
  0x9d   :  { %v1095_v40 = vpack.i.bf16 %v219_v39, %v206_v38  ;;  %v994_v39 = vunpack.c.h.bf16 %v1434_v33 }
  0x9e   :  { %v1112_v47 = vpack.i.bf16 %v271_v45, %v258_v44 }
  0xa3   :  { %1077 = vset.pattern.permute.xlu0 %v1361_v3  ;;  %1055 = vset.pattern.permute.xlu1 %v1361_v3 }
  0xa4   :  { %1045 = vperm.xlu2 %1032, %v1050_v19  }
  0xab   :  { %1079 = vperm.xlu0 %1077, %v1078_v26   ;;  %1057 = vperm.xlu1 %1055, %v1056_v27  }
  0xac   :  { %1061 = vset.pattern.permute.xlu2 %v1377_v7 }
  0xb3   :  { %1105 = vset.pattern.permute.xlu0 %v1377_v7  ;;  %1068 = vperm.xlu1 %1055, %v1067_v30  }
  0xb4   :  { %1063 = vperm.xlu2 %1061, %v1056_v27  }
  0xbb   :  { %1107 = vperm.xlu0 %1105, %v1106_v34   ;;  %1083 = vset.pattern.permute.xlu1 %v1377_v7 }
  0xbc   :  { %1073 = vperm.xlu2 %1061, %v1067_v30  }
  0xc3   :  { %1085 = vperm.xlu1 %1083, %v1078_v26   ;;  %1125 = vset.pattern.permute.xlu0 %v1292_v5 }
  0xc4   :  { %1089 = vset.pattern.permute.xlu2 %v1361_v3 }
  0xcb   :  { %1096 = vperm.xlu1 %1083, %v1095_v40  }
  0xcc   :  { %1091 = vperm.xlu2 %1089, %v1095_v40  }
  0xd3   :  { %1111 = vset.pattern.permute.xlu1 %v1361_v3  ;;  %v978_v3 = vunpack.c.h.bf16 %v1395_v55 }
  0xd4   :  { %1101 = vperm.xlu2 %1089, %v1106_v34  }
  0xdb   :  { %1113 = vperm.xlu1 %1111, %v1112_v47  }
  0xdc   :  { %1117 = vset.pattern.permute.xlu2 %v1377_v7  ;;  %v990_v7 = vunpack.c.h.bf16 %v1404_v0 }
  0xe3   :  { %1123 = vset.pattern.permute.xlu1 %v1292_v5 }
  0xe4   :  { %1119 = vperm.xlu2 %1117, %v1112_v47   ;;  %640 = vperm.xlu1 %1123, %v631_v53   ;;  %v1441_v47 = vld [vmem:[#allocation4 + $0x30] sm:$0xff]  }
  0xec   :  { %1124 = vset.pattern.permute.xlu2 %v1293_v6 }
  0xed   :  { %634 = vperm.xlu2 %1124, %v631_v53  }
  0xf6   :  { %v1035_v54 = vpop.permute.xlu2 %1034 }
  0xf7   :  { %v1037_v60 = vunpack.i.h.bf16 %v1035_v54  ;;  %v1036_v61 = vunpack.i.l.bf16 %v1035_v54 }
  0xf9   :  { %v505_v5 = vmul.f32 %v1037_v60, %v981_v59  ;;  %v503_v6 = vmul.f32 %v1036_v61, %v977_v58 }
  0xfb   :  { %v528_v20 = vsel %vm116_vm0, %v505_v5, 0.0  ;;  %v519_v22 = vsel %vm116_vm0, %v503_v6, 0.0  ;;  %v1002_v6 = vunpack.c.h.bf16 %v1441_v47 }
  0xfe   :  { %v1046_v62 = vpop.permute.xlu2 %1045 }
  0xff   :  { %v1047_v1 = vunpack.i.l.bf16 %v1046_v62  ;;  %v1048_v15 = vunpack.i.h.bf16 %v1046_v62 }
 0x101   :  { %v507_v16 = vmul.f32 %v1047_v1, %v985_v63  ;;  %v509_v26 = vmul.f32 %v1048_v15, %v989_v14 }
 0x103   :  { %v537_v30 = vsel %vm116_vm0, %v507_v16, 0.0  ;;  %v546_v37 = vsel %vm116_vm0, %v509_v26, 0.0  ;;  %v1001_v26 = vunpack.c.l.bf16 %v1441_v47 }
 0x10d   :  { %v1052_v8 = vpop.permute.xlu0 %1051  ;;  %v1041_v9 = vpop.permute.xlu1 %1040 }
 0x10e   :  { %v1054_v10 = vunpack.i.h.bf16 %v1052_v8  ;;  %v1053_v11 = vunpack.i.l.bf16 %v1052_v8  ;;  %v1043_v12 = vunpack.i.h.bf16 %v1041_v9  ;;  %v1042_v13 = vunpack.i.l.bf16 %v1041_v9  ;;  %v1064_v29 = vpop.permute.xlu2 %1063 }
 0x10f   :  { %v1066_v42 = vunpack.i.h.bf16 %v1064_v29  ;;  %v1065_v43 = vunpack.i.l.bf16 %v1064_v29  ;;  %v1006_v8 = vunpack.c.h.bf16 %v1443_v48 }
 0x110   :  { %v508_v17 = vmul.f32 %v1053_v11, %v986_v2  ;;  %v506_v18 = vmul.f32 %v1043_v12, %v982_v4  ;;  %v504_v19 = vmul.f32 %v1042_v13, %v978_v3  ;;  %v510_v21 = vmul.f32 %v1054_v10, %v990_v7 }
 0x111   :  { %v514_v52 = vmul.f32 %v1066_v42, %v998_v41  ;;  %v512_v53 = vmul.f32 %v1065_v43, %v994_v39 }
 0x112   :  { %v538_v23 = vsel %vm116_vm0, %v508_v17, 0.0  ;;  %v529_v24 = vsel %vm116_vm0, %v506_v18, 0.0  ;;  %v520_v25 = vsel %vm116_vm0, %v504_v19, 0.0  ;;  %v547_v31 = vsel %vm116_vm0, %v510_v21, 0.0 }
 0x113   :  { %v521_v27 = vadd.f32 %v520_v25, %v519_v22  ;;  %v530_v28 = vadd.f32 %v529_v24, %v528_v20  ;;  %v539_v32 = vadd.f32 %v538_v23, %v537_v30  ;;  %v548_v38 = vadd.f32 %v547_v31, %v546_v37 }
 0x114   :  { %v565_v15 = vsel %vm116_vm0, %v514_v52, 0.0  ;;  %v556_v16 = vsel %vm116_vm0, %v512_v53, 0.0 }
 0x115   :  { %v522_v34 = vrot.slane %v521_v27, 4  ;;  %v531_v35 = vrot.slane %v530_v28, 4  ;;  %v540_v40 = vrot.slane %v539_v32, 4  ;;  %v549_v46 = vrot.slane %v548_v38, 4 }
 0x116   :  { %v1074_v54 = vpop.permute.xlu2 %1073 }
 0x117   :  { %v523_v44 = vadd.f32 %v522_v34, %v521_v27  ;;  %v532_v45 = vadd.f32 %v531_v35, %v530_v28  ;;  %v541_v51 = vadd.f32 %v540_v40, %v539_v32  ;;  %v550_v9 = vadd.f32 %v549_v46, %v548_v38 }
 0x118   :  { %v1076_v10 = vunpack.i.h.bf16 %v1074_v54  ;;  %v1075_v17 = vunpack.i.l.bf16 %v1074_v54  ;;  %v1005_v27 = vunpack.c.l.bf16 %v1443_v48 }
 0x119   :  { %v524_v61 = vrot.slane %v523_v44, 2  ;;  %v533_v62 = vrot.slane %v532_v45, 2  ;;  %v542_v13 = vrot.slane %v541_v51, 2  ;;  %v551_v24 = vrot.slane %v550_v9, 2 }
 0x11a   :  { %v518_v25 = vmul.f32 %v1076_v10, %v1006_v8  ;;  %v516_v29 = vmul.f32 %v1075_v17, %v1002_v6 }
 0x11b   :  { %v525_v18 = vadd.f32 %v524_v61, %v523_v44  ;;  %v534_v19 = vadd.f32 %v533_v62, %v532_v45  ;;  %v543_v28 = vadd.f32 %v542_v13, %v541_v51  ;;  %v552_v44 = vadd.f32 %v551_v24, %v550_v9 }
 0x11c   :  { %v583_v45 = vsel %vm116_vm0, %v518_v25, 0.0  ;;  %v574_v54 = vsel %vm116_vm0, %v516_v29, 0.0 }
 0x11d   :  { %v1058_v60 = vpop.permute.xlu1 %1057  ;;  %v526_v34 = vrot.slane %v525_v18, 1  ;;  %v535_v35 = vrot.slane %v534_v19, 1  ;;  %v1080_v43 = vpop.permute.xlu0 %1079  ;;  %v544_v53 = vrot.slane %v543_v28, 1 }
 0x11e   :  { %v1060_v1 = vunpack.i.h.bf16 %v1058_v60  ;;  %v1059_v5 = vunpack.i.l.bf16 %v1058_v60 }
 0x11f   :  { %v527_v62 = vadd.f32 %v526_v34, %v525_v18  ;;  %v1081_v18 = vunpack.i.l.bf16 %v1080_v43 }
 0x120   :  { %v513_v11 = vmul.f32 %v1060_v1, %v997_v50  ;;  %v511_v12 = vmul.f32 %v1059_v5, %v993_v49  ;;  %v536_v1 = vadd.f32 %v535_v35, %v534_v19 }
 0x122   :  { %v564_v20 = vsel %vm116_vm0, %v513_v11, 0.0  ;;  %v555_v21 = vsel %vm116_vm0, %v511_v12, 0.0 }
 0x123   :  { %v557_v22 = vadd.f32 %v556_v16, %v555_v21  ;;  %v566_v23 = vadd.f32 %v565_v15, %v564_v20  ;;  %v545_v15 = vadd.f32 %v544_v53, %v543_v28  ;;  %v553_v21 = vrot.slane %v552_v44, 1 }
 0x125   :  { %v558_v30 = vrot.slane %v557_v22, 4  ;;  %v567_v31 = vrot.slane %v566_v23, 4  ;;  %v1069_v32 = vpop.permute.xlu1 %1068  ;;  %v554_v28 = vadd.f32 %v553_v21, %v552_v44 }
 0x126   :  { %v1071_v37 = vunpack.i.h.bf16 %v1069_v32  ;;  %v1070_v38 = vunpack.i.l.bf16 %v1069_v32  ;;  %v1472_v52 = vpop.permute.xlu2 %1091 }
 0x127   :  { %v559_v40 = vadd.f32 %v558_v30, %v557_v22  ;;  %v568_v42 = vadd.f32 %v567_v31, %v566_v23  ;;  %v599_v22 = vsel %vm381_vm11, %v536_v1, %v527_v62  ;;  %v1082_v23 = vunpack.i.h.bf16 %v1080_v43 }
 0x128   :  { %v517_v46 = vmul.f32 %v1071_v37, %v1005_v27  ;;  %v515_v51 = vmul.f32 %v1070_v38, %v1001_v26  ;;  %v600_v29 = vsel %vm383_vm12, %v545_v15, %v599_v22  ;;  %v284_v38 = vmul.f32 %v1081_v18, %v977_v58 }
 0x129   :  { %v560_v60 = vrot.slane %v559_v40, 2  ;;  %v569_v61 = vrot.slane %v568_v42, 2  ;;  %v286_v35 = vmul.f32 %v1082_v23, %v981_v59  ;;  %v961_v23 = vld [vmem:[#allocation9] sm:$0xff] }
 0x12a   :  { %v582_v5 = vsel %vm116_vm0, %v517_v46, 0.0  ;;  %v573_v9 = vsel %vm116_vm0, %v515_v51, 0.0  ;;  %v301_v58 = vsel %vm116_vm0, %v284_v38, 0.0 }
 0x12b   :  { %v561_v10 = vadd.f32 %v560_v60, %v559_v40  ;;  %v575_v11 = vadd.f32 %v574_v54, %v573_v9  ;;  %v584_v12 = vadd.f32 %v583_v45, %v582_v5  ;;  %v570_v13 = vadd.f32 %v569_v61, %v568_v42  ;;  %v962_v61 = vld [vmem:[#allocation9 + $0x8] sm:$0xff] }
 0x12c   :  { %v601_v45 = vsel %vm385_vm13, %v554_v28, %v600_v29  ;;  %v310_v59 = vsel %vm116_vm0, %v286_v35, 0.0  ;;  %683 = vmatpush.bf16.msra.mxu1 %v962_v61  ;;  %v966_v61 = vld [vmem:[%s1567_s5 + $0x8] sm:$0xff] }
 0x12d   :  { %v562_v16 = vrot.slane %v561_v10, 1  ;;  %v576_v17 = vrot.slane %v575_v11, 4  ;;  %v585_v20 = vrot.slane %v584_v12, 4  ;;  %v571_v25 = vrot.slane %v570_v13, 1  ;;  %v1108_v34 = vpop.permute.xlu0 %1107  ;;  %773 = vmatpush.bf16.msra.mxu3 %v966_v61 }
 0x12e   :  { %v1102_v37 = vpop.permute.xlu2 %1101  ;;  %v1109_v46 = vunpack.i.l.bf16 %v1108_v34 }
 0x12f   :  { %v577_v19 = vadd.f32 %v576_v17, %v575_v11  ;;  %v586_v24 = vadd.f32 %v585_v20, %v584_v12  ;;  %v563_v30 = vadd.f32 %v562_v16, %v561_v10  ;;  %v572_v43 = vadd.f32 %v571_v25, %v570_v13  ;;  %v398_v12 = vld [vmem:[#allocation3] sm:$0xff] }
 0x130   :  { %v1103_v54 = vunpack.i.l.bf16 %v1102_v37  ;;  %v1094_v10 = vunpack.i.h.bf16 %v1472_v52  ;;  %v1110_v13 = vunpack.i.h.bf16 %v1108_v34  ;;  %v293_v20 = vmul.f32 %v1109_v46, %v994_v39  ;;  %684 = vmatpush.bf16.msra.mxu1 %v961_v23 }
 0x131   :  { %v578_v31 = vrot.slane %v577_v19, 2  ;;  %v587_v32 = vrot.slane %v586_v24, 2  ;;  %v602_v51 = vsel %vm387_vm14, %v563_v30, %v601_v45  ;;  %v1104_v21 = vunpack.i.h.bf16 %v1102_v37 }
 0x132   :  { %v603_v11 = vsel %vm389_vm15, %v572_v43, %v602_v51  ;;  %v292_v22 = vmul.f32 %v1103_v54, %v993_v49  ;;  %v290_v39 = vmul.f32 %v1094_v10, %v989_v14  ;;  %v295_v33 = vmul.f32 %v1110_v13, %v998_v41 }
 0x133   :  { %v579_v40 = vadd.f32 %v578_v31, %v577_v19  ;;  %v588_v42 = vadd.f32 %v587_v32, %v586_v24  ;;  %v1093_v19 = vunpack.i.l.bf16 %v1472_v52  ;;  %v338_v49 = vsel %vm116_vm0, %v293_v20, 0.0 }
 0x134   :  { %v294_v52 = vmul.f32 %v1104_v21, %v997_v50  ;;  %v337_v25 = vsel %vm116_vm0, %v292_v22, 0.0  ;;  %v328_v36 = vsel %vm116_vm0, %v290_v39, 0.0  ;;  %v347_v50 = vsel %vm116_vm0, %v295_v33, 0.0 }
 0x135   :  { %v580_v53 = vrot.slane %v579_v40, 1  ;;  %v589_v44 = vrot.slane %v588_v42, 1  ;;  %v1086_v60 = vpop.permute.xlu1 %1085  ;;  %v288_v31 = vmul.f32 %v1093_v19, %v985_v63  ;;  %v339_v28 = vadd.f32 %v338_v49, %v337_v25 }
 0x136   :  { %v1088_v62 = vunpack.i.h.bf16 %v1086_v60  ;;  %v1087_v1 = vunpack.i.l.bf16 %v1086_v60  ;;  %v346_v37 = vsel %vm116_vm0, %v294_v52, 0.0 }
 0x137   :  { %v581_v5 = vadd.f32 %v580_v53, %v579_v40  ;;  %v590_v9 = vadd.f32 %v589_v44, %v588_v42  ;;  %v319_v40 = vsel %vm116_vm0, %v288_v31, 0.0  ;;  %v340_v46 = vrot.slane %v339_v28, 4  ;;  %v960_v53 = vld [vmem:[#allocation7 + $0x8] sm:$0xff] }
 0x138   :  { %v287_v15 = vmul.f32 %v1088_v62, %v982_v4  ;;  %v285_v16 = vmul.f32 %v1087_v1, %v978_v3  ;;  %v964_v44 = vld [vmem:[#allocation10 + $0x8] sm:$0xff]  ;;  %711 = vmatpush.bf16.msrb.mxu1 %v960_v53  ;;  %v959_v1 = vld [vmem:[#allocation7] sm:$0xff] }
 0x139   :  { %v604_v17 = vsel %vm391_vm1, %v581_v5, %v603_v11  ;;  %v341_v5 = vadd.f32 %v340_v46, %v339_v28  ;;  %741 = vmatpush.bf16.msra.mxu2 %v964_v44 }
 0x13a   :  { %v605_v18 = vsel %vm393_vm2, %v590_v9, %v604_v17  ;;  %v311_v56 = vsel %vm116_vm0, %v287_v15, 0.0  ;;  %v302_v4 = vsel %vm116_vm0, %v285_v16, 0.0  ;;  %v963_v9 = vld [vmem:[#allocation10] sm:$0xff] }
 0x13b   :  { %v607_v55 = vadd.f32 %v605_v18, %v398_v12  ;;  %v312_v3 = vadd.f32 %v311_v56, %v310_v59  ;;  %v303_v24 = vadd.f32 %v302_v4, %v301_v58  ;;  %v342_v21 = vrot.slane %v341_v5, 2 }
 0x13c   :  { %712 = vmatpush.bf16.msrb.mxu1 %v959_v1 }
 0x13d   :  { %608 = vst.msk [vmem:[#allocation3] sm:$0xff] %vm116_vm0, %v607_v55  ;;  %v313_v29 = vrot.slane %v312_v3, 4  ;;  %v1097_v30 = vpop.permute.xlu1 %1096  ;;  %v304_v32 = vrot.slane %v303_v24, 4  ;;  %742 = vmatpush.bf16.msra.mxu2 %v963_v9  ;;  %v343_v52 = vadd.f32 %v342_v21, %v341_v5 }
 0x13e   :  { %v1099_v34 = vunpack.i.h.bf16 %v1097_v30  ;;  %v1098_v14 = vunpack.i.l.bf16 %v1097_v30  ;;  %v1120_v60 = vpop.permute.xlu2 %1119 }
 0x13f   :  { %v314_v38 = vadd.f32 %v313_v29, %v312_v3  ;;  %v305_v63 = vadd.f32 %v304_v32, %v303_v24  ;;  %v1122_v12 = vunpack.i.h.bf16 %v1120_v60  ;;  %v1121_v13 = vunpack.i.l.bf16 %v1120_v60 }
 0x140   :  { %v291_v41 = vmul.f32 %v1099_v34, %v990_v7  ;;  %v289_v35 = vmul.f32 %v1098_v14, %v986_v2  ;;  %v348_v7 = vadd.f32 %v347_v50, %v346_v37 }
 0x141   :  { %v315_v57 = vrot.slane %v314_v38, 2  ;;  %v306_v54 = vrot.slane %v305_v63, 2  ;;  %v299_v23 = vmul.f32 %v1122_v12, %v1006_v8  ;;  %v297_v18 = vmul.f32 %v1121_v13, %v1002_v6  ;;  %v965_v6 = vld [vmem:[%s1567_s5] sm:$0xff] }
 0x142   :  { %v329_v42 = vsel %vm116_vm0, %v291_v41, 0.0  ;;  %v320_v43 = vsel %vm116_vm0, %v289_v35, 0.0  ;;  %v349_v58 = vrot.slane %v348_v7, 4  ;;  %774 = vmatpush.bf16.msra.mxu3 %v965_v6  ;;  %v344_v41 = vrot.slane %v343_v52, 1 }
 0x143   :  { %v321_v45 = vadd.f32 %v320_v43, %v319_v40  ;;  %v330_v0 = vadd.f32 %v329_v42, %v328_v36  ;;  %v316_v10 = vadd.f32 %v315_v57, %v314_v38  ;;  %v307_v15 = vadd.f32 %v306_v54, %v305_v63 }
 0x144   :  { %v350_v20 = vadd.f32 %v349_v58, %v348_v7  ;;  %v365_v8 = vsel %vm116_vm0, %v299_v23, 0.0  ;;  %v356_v29 = vsel %vm116_vm0, %v297_v18, 0.0  ;;  %v638_v37 = vld [vmem:[#allocation3] sm:$0xff]  ;;  %v345_v57 = vadd.f32 %v344_v41, %v343_v52  ;;  %v973_v23 = vld [vmem:[#allocation12 + $0x30] sm:$0xff] }
 0x145   :  { %v322_v2 = vrot.slane %v321_v45, 4  ;;  %v331_v51 = vrot.slane %v330_v0, 4  ;;  %v317_v22 = vrot.slane %v316_v10, 1  ;;  %v308_v56 = vrot.slane %v307_v15, 1  ;;  %v972_v18 = vld [vmem:[#allocation12 + $0x28] sm:$0xff] }
 0x146   :  { %v351_v39 = vrot.slane %v350_v20, 2 }
 0x147   :  { %v323_v59 = vadd.f32 %v322_v2, %v321_v45  ;;  %v332_v62 = vadd.f32 %v331_v51, %v330_v0  ;;  %v318_v25 = vadd.f32 %v317_v22, %v316_v10  ;;  %v309_v30 = vadd.f32 %v308_v56, %v307_v15  ;;  %v635_v10 = vpop.permute.xlu2 %634  ;;  %v974_v22 = vld [vmem:[#allocation12 + $0x38] sm:$0xff] }
 0x148   :  { %v352_v28 = vadd.f32 %v351_v39, %v350_v20  ;;  %856 = vmatpush.bf16.msra.mxu0 %v974_v22  ;;  %v970_v56 = vld [vmem:[#allocation12 + $0x18] sm:$0xff] }
 0x149   :  { %v324_v11 = vrot.slane %v323_v59, 2  ;;  %v333_v16 = vrot.slane %v332_v62, 2  ;;  %v382_v35 = vsel %vm381_vm11, %v318_v25, %v309_v30 }
 0x14a   :  { %v353_v7 = vrot.slane %v352_v28, 1 }
 0x14b   :  { %v325_v17 = vadd.f32 %v324_v11, %v323_v59  ;;  %v334_v4 = vadd.f32 %v333_v16, %v332_v62  ;;  %v179_v62 = vld [vmem:[#allocation2] sm:$0xff] }
 0x14c   :  { %v354_v60 = vadd.f32 %v353_v7, %v352_v28  ;;  %857 = vmatpush.bf16.msra.mxu0 %v973_v23 }
 0x14d   :  { %v1114_v19 = vpop.permute.xlu1 %1113  ;;  %v326_v24 = vrot.slane %v325_v17, 1  ;;  %v335_v31 = vrot.slane %v334_v4, 1 }
 0x14e   :  { %v1116_v55 = vunpack.i.h.bf16 %v1114_v19  ;;  %v1115_v3 = vunpack.i.l.bf16 %v1114_v19  ;;  %v971_v19 = vld [vmem:[#allocation12 + $0x20] sm:$0xff] }
 0x14f   :  { %v336_v36 = vadd.f32 %v335_v31, %v334_v4  ;;  %v969_v4 = vld [vmem:[#allocation12 + $0x10] sm:$0xff] }
 0x150   :  { %v298_v33 = vmul.f32 %v1116_v55, %v1005_v27  ;;  %v296_v49 = vmul.f32 %v1115_v3, %v1001_v26  ;;  %v327_v27 = vadd.f32 %v326_v24, %v325_v17  ;;  %858 = vmatpush.bf16.msra.mxu0 %v972_v18  ;;  %v968_v3 = vld [vmem:[#allocation12 + $0x8] sm:$0xff]  ;;  %v967_v24 = vld [vmem:[#allocation12] sm:$0xff] }
 0x152   :  { %v364_v32 = vsel %vm116_vm0, %v298_v33, 0.0  ;;  %v355_v48 = vsel %vm116_vm0, %v296_v49, 0.0  ;;  %v384_v38 = vsel %vm383_vm12, %v327_v27, %v382_v35 }
 0x153   :  { %v357_v34 = vadd.f32 %v356_v29, %v355_v48  ;;  %v366_v47 = vadd.f32 %v365_v8, %v364_v32  ;;  %v386_v46 = vsel %vm385_vm13, %v336_v36, %v384_v38  ;;  %v1126_v29 = vld [vmem:[%s1568_s6] ss:$0 sm:$0xff] }
 0x154   :  { %v388_v53 = vsel %vm387_vm14, %v345_v57, %v386_v46  ;;  %859 = vmatpush.bf16.msra.mxu0 %v971_v19 }
 0x155   :  { %v358_v26 = vrot.slane %v357_v34, 4  ;;  %v367_v14 = vrot.slane %v366_v47, 4  ;;  %v390_v1 = vsel %vm389_vm15, %v354_v60, %v388_v53 }
 0x156   :  { %v641_v50 = vpop.permute.xlu1 %640 }
 0x157   :  { %v359_v40 = vadd.f32 %v358_v26, %v357_v34  ;;  %v368_v63 = vadd.f32 %v367_v14, %v366_v47  ;;  %v643_v42 = vmul.f32 %v641_v50, %v638_v37  ;;  %v1127_v47 = vld [vmem:[%s1570_s8] ss:$0 sm:$0xff] }
 0x158   :  { %860 = vmatpush.bf16.msra.mxu0 %v970_v56 }
 0x159   :  { %v360_v43 = vrot.slane %v359_v40, 2  ;;  %v369_v45 = vrot.slane %v368_v63, 2  ;;  %v661_v0 = vpack.c.bf16 %v643_v42, %v643_v42 }
 0x15b   :  { %v361_v2 = vadd.f32 %v360_v43, %v359_v40  ;;  %v370_v51 = vadd.f32 %v369_v45, %v368_v63  ;;  %899 = vmatmul.msk.bf16.vlgmr.msra.gmra.mxu1 %vm116_vm0, %v661_v0 }
 0x15c   :  { %861 = vmatpush.bf16.msra.mxu0 %v969_v4 }
 0x15d   :  { %v362_v44 = vrot.slane %v361_v2, 1  ;;  %v371_v54 = vrot.slane %v370_v51, 1 }
 0x15f   :  { %v363_v61 = vadd.f32 %v362_v44, %v361_v2  ;;  %v372_v59 = vadd.f32 %v371_v54, %v370_v51 }
 0x160   :  { %862 = vmatpush.bf16.msra.mxu0 %v968_v3 }
 0x161   :  { %v392_v58 = vsel %vm391_vm1, %v363_v61, %v390_v1 }
 0x162   :  { %v394_v5 = vsel %vm393_vm2, %v372_v59, %v392_v58 }
 0x163   :  { %v396_v9 = vadd.f32 %v394_v5, %v179_v62 }
 0x164   :  { %863 = vmatpush.bf16.msra.mxu0 %v967_v24 }
 0x165   :  { %397 = vst.msk [vmem:[#allocation2] sm:$0xff] %vm116_vm0, %v396_v9 }
 0x16c   :  { %v617_v11 = vld [vmem:[#allocation2] sm:$0xff] }
 0x16d   :  { %v637_v12 = vmul.f32 %v635_v10, %v617_v11 }
 0x16f   :  { %v660_v13 = vpack.c.bf16 %v637_v12, %v637_v12  ;;  %v718_v15 = vmul.f32 %v643_v42, %v637_v12  ;;  %v749_v16 = vsub.f32 %v637_v12, %v643_v42 }
 0x171   :  { %908 = vmatmul.msk.bf16.vlgmr.msrb.gmra.mxu1 %vm116_vm0, %v660_v13  ;;  %v719_v17 = vpack.c.bf16 %v718_v15, %v718_v15  ;;  %v750_v20 = vand.u32 2147483647, %v749_v16 }
 0x173   :  { %917 = vmatmul.msk.bf16.vlgmr.msra.gmra.mxu2 %vm116_vm0, %v719_v17  ;;  %v751_v21 = vpack.c.bf16 %v750_v20, %v750_v20 }
 0x175   :  { %926 = vmatmul.msk.bf16.vlgmr.msra.gmra.mxu3 %vm116_vm0, %v751_v21 }
 0x1d8   :  { %v686_v55 = vpop.f32.mrf.mxu1 }
 0x1e0   :  { %v688_v39 = vpop.f32.mrf.mxu1 }
 0x1ee   :  { %v714_v33 = vpop.f32.mrf.mxu1 }
 0x1ef   :  { %v715_v49 = vadd.f32 %v714_v33, %v686_v55 }
 0x1f6   :  { %v716_v52 = vpop.f32.mrf.mxu1  ;;  %v744_v25 = vpop.f32.mrf.mxu2 }
 0x1f7   :  { %v748_v8 = vadd.f32 %v744_v25, %v715_v49 }
 0x1f8   :  { %v776_v6 = vpop.f32.mrf.mxu3 }
 0x1f9   :  { %v780_v30 = vadd.f32 %v776_v6, %v748_v8 }
 0x1fb   :  { %v785_v31 = vadd.f32 %v1126_v29, %v780_v30 }
 0x1fd   :  { %v786_v32 = vmax.f32 %v785_v31, 0.0 }
 0x1fe   :  { %v746_v48 = vpop.f32.mrf.mxu2 }
 0x1ff   :  { %v803_v27 = vpack.c.bf16 %v786_v32, %v786_v32 }
 0x200   :  { %v778_v34 = vpop.f32.mrf.mxu3 }
 0x201   :  { %864 = vmatmul.bf16.vlgmr.msra.gmra.mxu0 %v803_v27 }
 0x27e   :  { %v865_v26 = vpop.f32.mrf.mxu0 }
 0x27f   :  { %v866_v14 = vadd.f32 %v1127_v47, %v865_v26 }
 0x281   :  { %869 = vst [vmem:[#allocation13] sm:$0xff] %v866_v14 }
 0x282   :  { %880 = dma.vmem_to_hbm [thread:$0]  %s876_s20, 128, %s878_s23, [#allocation6]  }
 0x286   :  { %v867_v28 = vpop.f32.mrf.mxu0 }
 0x287   :  { %1280 = dma.done.wait [#allocation6], 128  }
 0x288   :  { %1281 = vsyncadd [#allocation6], 4294967168 }
 0x289   :  { %885 = vsyncpa [#allocation5], 1 }
 0x28a   :  { %886 = vsyncpa [#allocation8], 1 }
 0x28b   :  { %887 = vsyncpa [#allocation11], 1 }
 0x28c   :  { %888 = vsyncpa [#allocation6], 1 }

</bundles_post_ra>
